<compile_context>
chip_gen: v5e
topology: v5e:2x2
jax: 0.10.0
libtpu: 0.0.40
codegen_flags: <defaults>
</compile_context>

<pallas_src>
import functools

import jax
import jax.numpy as jnp
from jax import lax
from jax.experimental import pallas as pl
from jax.experimental.pallas import tpu as pltpu

LANES = 128
MAX_TILE_ROWS = 1024   # 1024x128 f32 tile = 512 KiB; x2 inputs x2 buffers = 2 MiB VMEM
NUM_SLICES = 2         # leading "parallel" grid axis (v7x has 2 TensorCores; no-op elsewhere)


def _round_up(a, b):
    return (a + b - 1) // b * b


def _cdiv(a, b):
    return (a + b - 1) // b


def _sublane_multiple(dtype):
    # Minimum second-to-last block dim per dtype packing (f32:8, bf16/f16:16, int8/fp8:32).
    return {4: 8, 2: 16, 1: 32}.get(jnp.dtype(dtype).itemsize, 8)


def _flatten_to_lanes(x):
    """Flatten to a lane-dense (rows, 128) slab.

    Only pads (i.e. copies) when numel is not a multiple of 128; the zero padding
    contributes 0 to the sum, and the mean uses the true element count.
    """
    flat = x.reshape(-1)
    n = flat.shape[0]
    n_pad = _round_up(n, LANES)
    if n_pad != n:
        flat = jnp.pad(flat, (0, n_pad - n))
    return flat.reshape(-1, LANES), n


def _mse_kernel(x_ref, t_ref, out_ref, acc_ref, *, inv_n, tile_rows,
                steps_per_slice, valid_rows, need_mask):
    j = pl.program_id(1)

    @pl.when(j == 0)
    def _init():
        acc_ref[...] = jnp.zeros_like(acc_ref)

    d = x_ref[...].astype(jnp.float32) - t_ref[...].astype(jnp.float32)
    if need_mask:
        # Mask rows that fall beyond the real array (ragged last tile and/or
        # "ghost" tiles of an uneven parallel split). Uses the logical tile index.
        tile_idx = pl.program_id(0) * steps_per_slice + j
        row = tile_idx * tile_rows + lax.broadcasted_iota(
            jnp.int32, (tile_rows, LANES), 0)
        d = jnp.where(row < valid_rows, d, 0.0)

    dsq = d * d
    # Fold the tile into one (8, 128) vreg accumulator: pure VPU adds in the hot loop,
    # the full cross-lane/XLU reduction happens only once in the finalize branch.
    acc_ref[...] += dsq.reshape(tile_rows // 8, 8, LANES).sum(axis=0)

    @pl.when(j == pl.num_programs(1) - 1)
    def _finalize():
        total = jnp.sum(acc_ref[...], keepdims=True)        # (1, 1)
        out_ref[...] = total * inv_n                        # per-slice partial of the mean


def _mse_partial_sums(x2d, t2d, n_valid):
    """Returns mean((x - t)^2) over the n_valid real elements, via one pallas_call."""
    rows = x2d.shape[0]
    sub = max(_sublane_multiple(x2d.dtype), _sublane_multiple(t2d.dtype))
    tile_rows = min(MAX_TILE_ROWS, _round_up(rows, sub))

    tiles_total = _cdiv(rows, tile_rows)
    p = min(NUM_SLICES, tiles_total)
    steps = _cdiv(tiles_total, p)
    need_mask = (rows % tile_rows != 0) or (p * steps != tiles_total)

    if p * steps == tiles_total:
        def in_map(pi, ji):
            return (pi * steps + ji, 0)
    else:
        last_tile = tiles_total - 1

        def in_map(pi, ji):
            # Clamp so ghost tiles never issue a fully out-of-bounds DMA; their
            # contribution is zeroed by the in-kernel row mask.
            return (jnp.minimum(pi * steps + ji, last_tile), 0)

    kernel = functools.partial(
        _mse_kernel,
        inv_n=1.0 / float(n_valid),
        tile_rows=tile_rows,
        steps_per_slice=steps,
        valid_rows=rows,
        need_mask=need_mask,
    )

    in_bytes = (x2d.size * x2d.dtype.itemsize) + (t2d.size * t2d.dtype.itemsize)
    partials = pl.pallas_call(
        kernel,
        out_shape=jax.ShapeDtypeStruct((p, 1, 1), jnp.float32),
        grid_spec=pltpu.PrefetchScalarGridSpec(
            num_scalar_prefetch=0,
            grid=(p, steps),
            in_specs=[
                pl.BlockSpec((tile_rows, LANES), in_map),
                pl.BlockSpec((tile_rows, LANES), in_map),
            ],
            out_specs=pl.BlockSpec((None, 1, 1), lambda pi, ji: (pi, 0, 0)),
            scratch_shapes=[pltpu.VMEM((8, LANES), jnp.float32)],
        ),
        compiler_params=pltpu.CompilerParams(
            dimension_semantics=("parallel", "arbitrary"),
        ),
        cost_estimate=pl.CostEstimate(
            flops=3 * x2d.size,
            transcendentals=0,
            bytes_accessed=in_bytes + 4 * p,
        ),
    )(x2d, t2d)
    return jnp.sum(partials)


def _content_mse(x, t2d, *, n_valid):
    x2d, _ = _flatten_to_lanes(x)
    return _mse_partial_sums(x2d, t2d, n_valid)


class ContentLoss:
    """JAX/Pallas port of the PyTorch ContentLoss module (L2 distance branch)."""

    def __init__(self, target):
        # .detach() equivalent
        self.target = lax.stop_gradient(target)
        # Cache the flattened/lane-padded target once (avoid re-padding per forward).
        self._t2d, self._n = _flatten_to_lanes(self.target)
        self._loss_fn = jax.jit(functools.partial(_content_mse, n_valid=self._n))
        self.loss = None

    def __call__(self, x):
        assert x.shape == self.target.shape, (x.shape, self.target.shape)
        self.loss = self._loss_fn(x, self._t2d)
        return x  # forward passes input through unchanged


if __name__ == "__main__":
    key = jax.random.PRNGKey(0)
    k1, k2 = jax.random.split(key)

    # Small VGG-feature-like shape, NCHW.
    B, C, H, W = 2, 4, 16, 16
    target = jax.random.normal(k1, (B, C, H, W), dtype=jnp.float32)
    x = jax.random.normal(k2, (B, C, H, W), dtype=jnp.float32)

    module = ContentLoss(target)
    out = module(x)

    out = jax.block_until_ready(out)
    loss = jax.block_until_ready(module.loss)

    # Cross-check against plain JAX reference.
    ref = jnp.mean((x - target) ** 2)
    assert out.shape == x.shape and out.dtype == x.dtype
    assert jnp.allclose(loss, ref, rtol=1e-5, atol=1e-6), (loss, ref)

    print("KERNEL_OK")
</pallas_src>

<mosaic_0001>
module attributes {stable_mosaic.version = 11 : i64} {
  func.func @_mse_kernel(%arg0: i32, %arg1: i32, %arg2: memref<16x128xf32, #tpu.memory_space<vmem>>, %arg3: memref<16x128xf32, #tpu.memory_space<vmem>>, %arg4: memref<1x1x1xf32, #tpu.memory_space<vmem>>, %arg5: memref<8x128xf32, #tpu.memory_space<vmem>>) attributes {dimension_semantics = [#tpu.dimension_semantics<parallel>, #tpu.dimension_semantics<arbitrary>], iteration_bounds = array<i64: 1, 1>, scalar_prefetch = 0 : i64, scratch_operands = 1 : i64, tpu.core_type = #tpu.core_type<tc>, window_params = [{transform_indices = @transform_0, window_bounds = array<i64: 16, 128>}, {transform_indices = @transform_1, window_bounds = array<i64: 16, 128>}, {transform_indices = @transform_2, window_bounds = array<i64: 1, 1, 1>}]} {
    %c0_i32 = arith.constant 0 : i32
    %0 = arith.cmpi eq, %arg1, %c0_i32 : i32
    %1 = arith.extui %0 : i1 to i32
    %c0_i32_0 = arith.constant 0 : i32
    %2 = arith.cmpi ne, %1, %c0_i32_0 : i32
    scf.if %2 {
      %cst_10 = arith.constant 0.000000e+00 : f32
      %15 = vector.broadcast %cst_10 : f32 to vector<8x128xf32>
      %c0_11 = arith.constant 0 : index
      %c0_12 = arith.constant 0 : index
      %16 = vector.load %arg5[%c0_11, %c0_12] : memref<8x128xf32, #tpu.memory_space<vmem>>, vector<8x128xf32>
      tpu.vector_store %arg5[%c0_11, %c0_12], %15 {strides = array<i32>} : memref<8x128xf32, #tpu.memory_space<vmem>>, vector<8x128xf32>,
    } else {
    }
    %c0 = arith.constant 0 : index
    %c0_1 = arith.constant 0 : index
    %3 = vector.load %arg2[%c0, %c0_1] : memref<16x128xf32, #tpu.memory_space<vmem>>, vector<16x128xf32>
    %c0_2 = arith.constant 0 : index
    %c0_3 = arith.constant 0 : index
    %4 = vector.load %arg3[%c0_2, %c0_3] : memref<16x128xf32, #tpu.memory_space<vmem>>, vector<16x128xf32>
    %5 = arith.subf %3, %4 : vector<16x128xf32>
    %6 = arith.mulf %5, %5 : vector<16x128xf32>
    %c0_4 = arith.constant 0 : index
    %c0_5 = arith.constant 0 : index
    %7 = vector.load %arg5[%c0_4, %c0_5] : memref<8x128xf32, #tpu.memory_space<vmem>>, vector<8x128xf32>
    %8 = vector.shape_cast %6 : vector<16x128xf32> to vector<2x8x128xf32>
    %cst = arith.constant dense<0.000000e+00> : vector<8x128xf32>
    %9 = vector.multi_reduction <add>, %8, %cst [0] : vector<2x8x128xf32> to vector<8x128xf32>
    %10 = arith.addf %7, %9 : vector<8x128xf32>
    %c0_6 = arith.constant 0 : index
    %c0_7 = arith.constant 0 : index
    %11 = vector.load %arg5[%c0_6, %c0_7] : memref<8x128xf32, #tpu.memory_space<vmem>>, vector<8x128xf32>
    tpu.vector_store %arg5[%c0_6, %c0_7], %10 {strides = array<i32>} : memref<8x128xf32, #tpu.memory_space<vmem>>, vector<8x128xf32>,
    %c0_i32_8 = arith.constant 0 : i32
    %12 = arith.cmpi eq, %arg1, %c0_i32_8 : i32
    %13 = arith.extui %12 : i1 to i32
    %c0_i32_9 = arith.constant 0 : i32
    %14 = arith.cmpi ne, %13, %c0_i32_9 : i32
    scf.if %14 {
      %c0_10 = arith.constant 0 : index
      %c0_11 = arith.constant 0 : index
      %15 = vector.load %arg5[%c0_10, %c0_11] : memref<8x128xf32, #tpu.memory_space<vmem>>, vector<8x128xf32>
      %16 = vector.shape_cast %15 : vector<8x128xf32> to vector<1x8x128xf32>
      %cst_12 = arith.constant dense<0.000000e+00> : vector<1xf32>
      %17 = vector.multi_reduction <add>, %16, %cst_12 [1, 2] : vector<1x8x128xf32> to vector<1xf32>
      %18 = vector.shape_cast %17 : vector<1xf32> to vector<1x1x1xf32>
      %19 = vector.extract %18[0, 0, 0] : f32 from vector<1x1x1xf32>
      %20 = vector.broadcast %19 : f32 to vector<1x1xf32>
      %cst_13 = arith.constant 4.8828125E-4 : f32
      %21 = vector.broadcast %cst_13 : f32 to vector<1x1xf32>
      %22 = arith.mulf %20, %21 : vector<1x1xf32>
      %c0_14 = arith.constant 0 : index
      %c0_15 = arith.constant 0 : index
      %c0_16 = arith.constant 0 : index
      %23 = vector.load %arg4[%c0_14, %c0_15, %c0_16] : memref<1x1x1xf32, #tpu.memory_space<vmem>>, vector<1x1x1xf32>
      %24 = vector.shape_cast %23 : vector<1x1x1xf32> to vector<1x1xf32>
      %25 = vector.shape_cast %22 : vector<1x1xf32> to vector<1x1x1xf32>
      tpu.vector_store %arg4[%c0_14, %c0_15, %c0_16], %25 {strides = array<i32>} : memref<1x1x1xf32, #tpu.memory_space<vmem>>, vector<1x1x1xf32>,
    } else {
    }
    return
  }
  func.func @transform_0(%arg0: i32, %arg1: i32) -> (i32, i32) {
    %c1_i32 = arith.constant 1 : i32
    %0 = arith.muli %arg0, %c1_i32 : i32
    %1 = arith.addi %0, %arg1 : i32
    %c0_i32 = arith.constant 0 : i32
    %c0_i32_0 = arith.constant 0 : i32
    return %1, %c0_i32 : i32, i32
  }
  func.func @transform_1(%arg0: i32, %arg1: i32) -> (i32, i32) {
    %c1_i32 = arith.constant 1 : i32
    %0 = arith.muli %arg0, %c1_i32 : i32
    %1 = arith.addi %0, %arg1 : i32
    %c0_i32 = arith.constant 0 : i32
    %c0_i32_0 = arith.constant 0 : i32
    return %1, %c0_i32 : i32, i32
  }
  func.func @transform_2(%arg0: i32, %arg1: i32) -> (i32, i32, i32) {
    %c0_i32 = arith.constant 0 : i32
    %c0_i32_0 = arith.constant 0 : i32
    %c0_i32_1 = arith.constant 0 : i32
    return %arg0, %c0_i32, %c0_i32_0 : i32, i32, i32
  }
}

</mosaic_0001>

<bundles_post_ra>
// kernel: _content_mse.1
= control target key start
LH: loop header
LB: loop body
LE: loop exit
PB: predicated region body
PF: predicated region fallthrough
CT: control target
= control target key end

     0   :  { %s178_s0 = inlined_call_operand.vmem [shape: f32[16,128], index: 0, kind: input, shape index: {}]   ;;  %s179_s1 = inlined_call_operand.vmem [shape: f32[16,128], index: 1, kind: input, shape index: {}]   ;;  %s180_s2 = inlined_call_operand.hbm [shape: f32[1,1,1], index: 2, kind: output, shape index: {}]  }
   0x1   :  { %v61_v0 = vld [vmem:[%s178_s0] sm:$0xff]  ;;  %v62_v1 = vld [vmem:[%s178_s0 + $0x8] sm:$0xff] }
   0x2   :  { %v63_v2 = vld [vmem:[%s179_s1] sm:$0xff]  ;;  %v64_v3 = vld [vmem:[%s179_s1 + $0x8] sm:$0xff] }
   0x3   :  { %v65_v4 = vsub.f32 %v61_v0, %v63_v2 }
   0x4   :  { %7 = vsyncpa [#allocation4], 0  ;;  %v66_v5 = vsub.f32 %v62_v1, %v64_v3  ;;  %s147_s0 = smov [#allocation3]   ;;  %s97_s1 = sshll.u32 %s180_s2, 4  ;;  %vm88_vm0 = vcmask 0   ;;  %s98_s1 = int_to_ptr.hbm [resolvable:$true] %s97_s1 }
   0x5   :  { %v67_v6 = vmul.f32 %v65_v4, %v65_v4  ;;  %s95_s17 = sshll.u32 %s147_s0, 4  ;;  %s96_s17 = int_to_ptr.vmem [resolvable:$true] %s95_s17 }
   0x6   :  { %v68_v7 = vmul.f32 %v66_v5, %v66_v5 }
   0x8   :  { %v70_v8 = vadd.f32 %v68_v7, %v67_v6 }
   0xa   :  { %77 = vadd.xlane.f32.xlu0 %v70_v8 }
  0x7d   :  { %v78_v9 = vpop.xlane.xlu0 %77 }
  0x7e   :  { %v79_v10 = vrot.slane %v78_v9, 4 }
  0x80   :  { %v80_v11 = vadd.f32 %v79_v10, %v78_v9 }
  0x82   :  { %v81_v12 = vrot.slane %v80_v11, 2 }
  0x84   :  { %v82_v13 = vadd.f32 %v81_v12, %v80_v11 }
  0x86   :  { %v83_v14 = vrot.slane %v82_v13, 1 }
  0x88   :  { %v84_v15 = vadd.f32 %v83_v14, %v82_v13 }
  0x8a   :  { %118 = vpush %v84_v15 }
  0xbb   :  { %s119_s20 = spop %118 }
  0xbc   :  { %v86_v16 = vstv %s119_s20 }
  0xbd   :  { %v87_v17 = vmul.f32 0.00048828125, %v86_v16 }
  0xbf   :  { %89 = vst.msk [vmem:[#allocation3] sm:$0x1] %vm88_vm0, %v87_v17 }
  0xc0   :  { %100 = dma.vmem_to_hbm [thread:$0]  %s96_s17, 16, %s98_s1, [#allocation4]  }
  0xc1   :  { %145 = dma.done.wait [#allocation4], 16  }
  0xc2   :  { %146 = vsyncadd [#allocation4], 4294967280 }
  0xc3   :  { %105 = vsyncpa [#allocation4], 1 }

</bundles_post_ra>
